<compile_context>
chip_gen: v6e
topology: v6e:2x2x1
jax: 0.10.0
libtpu: 0.0.40
codegen_flags: <defaults>
</compile_context>

<pallas_src>
from functools import partial

import jax
import jax.numpy as jnp
from jax import lax
from jax.experimental import pallas as pl
from jax.experimental.pallas import tpu as pltpu

_EPS = 1e-8  # matches torch.nn.functional.cosine_similarity eps


def _infonce_step_kernel(*refs, inv_temperature, n_valid, tile_n,
                         tiles_per_core, n_splits, needs_tail_mask):
    """One N-tile of the per-step InfoNCE loss.

    refs = (zc_ref, zo_ref_0 .. zo_ref_{P-1}, out_ref, acc_ref)
      zc_ref   : (D, TN)      current embeddings, N on lanes
      zo_ref_p : (D, TN)      p == 0 -> positives (z_future), p > 0 -> negatives
      out_ref  : (1, 8, 128)  per-core output slab ([0, 0, 0] = partial CE sum)
      acc_ref  : (1,) SMEM    running sum of per-column CE losses (this core)
    """
    zc_ref = refs[0]
    zo_refs = refs[1:-2]
    out_ref = refs[-2]
    acc_ref = refs[-1]

    c = pl.program_id(0)   # core-split index  ("parallel")
    i = pl.program_id(1)   # tile index within this core  ("arbitrary")

    @pl.when(i == 0)
    def _init():
        acc_ref[0] = jnp.float32(0.0)
        out_ref[...] = jnp.zeros_like(out_ref)

    # Stream at source dtype, upcast in-kernel (f32 math everywhere below).
    zc = zc_ref[...].astype(jnp.float32)                               # (D, TN)
    nc = jnp.maximum(jnp.sqrt(jnp.sum(zc * zc, axis=0, keepdims=True)), _EPS)

    # Unrolled over the tiny class axis P: no (P, D, TN) temporaries, each
    # (D, TN) product feeds its cheap sublane (D) reduction directly.
    logits = []
    for zo_ref in zo_refs:
        zp = zo_ref[...].astype(jnp.float32)                           # (D, TN)
        dotp = jnp.sum(zc * zp, axis=0, keepdims=True)                 # (1, TN)
        np_ = jnp.maximum(jnp.sqrt(jnp.sum(zp * zp, axis=0, keepdims=True)),
                          _EPS)
        # Exact divide: approx-reciprocal error would be amplified by 1/T.
        logits.append((dotp / (nc * np_)) * inv_temperature)           # (1, TN)

    # Cross-entropy with target = 0 (positive row), per column:
    #   loss_j = logsumexp_p(logits[p, j]) - logits[0, j]
    m = logits[0]
    for lg in logits[1:]:
        m = jnp.maximum(m, lg)
    ssum = jnp.exp(logits[0] - m)
    for lg in logits[1:]:
        ssum = ssum + jnp.exp(lg - m)
    per_col = m + jnp.log(ssum) - logits[0]                            # (1, TN)

    if not needs_tail_mask:
        acc_ref[0] += jnp.sum(per_col)
    else:
        # Only the globally-last tile can contain padded / OOB columns.
        is_tail = jnp.logical_and(c == n_splits - 1, i == tiles_per_core - 1)

        @pl.when(jnp.logical_not(is_tail))
        def _interior():
            acc_ref[0] += jnp.sum(per_col)

        @pl.when(is_tail)
        def _tail():
            gt = c * tiles_per_core + i
            col = gt * tile_n + lax.broadcasted_iota(jnp.int32, (1, tile_n), 1)
            acc_ref[0] += jnp.sum(jnp.where(col < n_valid, per_col, 0.0))

    @pl.when(i == tiles_per_core - 1)
    def _finalize():
        out_ref[...] = jnp.full(out_ref.shape, acc_ref[0], dtype=jnp.float32)


def _choose_tile_n(n, d, n_streams, itemsize):
    """Lane-tile width: multiple of 128, sized for double-buffered VMEM."""
    budget = 12 * 1024 * 1024                # headroom even for v7x (64 MiB)
    per_col = 2 * n_streams * d * itemsize   # 2 buffers per streamed input
    tn = (budget // per_col) // 128 * 128
    tn = int(max(1024, min(8192, tn)))       # raised cap per perf review
    if n <= tn:                              # single-tile case
        tn = max(128, ((n + 127) // 128) * 128)
    return tn


def _infonce_step(zc_t, others_t, temperature):
    """Runs the Pallas kernel for one prediction step; returns scalar loss.

    zc_t: (D, N);  others_t: list of P arrays (D, N), entry 0 = positives.
    """
    d, n = zc_t.shape
    p = len(others_t)
    itemsize = jnp.dtype(zc_t.dtype).itemsize

    tn = _choose_tile_n(n, d, p + 1, itemsize)
    num_tiles = -(-n // tn)
    # 2-way core split (v7x megacore) only when it divides the tile count, so
    # no block index ever goes out of range; serial (and harmless) on v5e/v6e.
    n_splits = 2 if (num_tiles % 2 == 0 and num_tiles >= 2) else 1
    tiles_per_core = num_tiles // n_splits
    needs_tail_mask = (num_tiles * tn != n)

    kernel = partial(
        _infonce_step_kernel,
        inv_temperature=float(1.0 / temperature),
        n_valid=n,
        tile_n=tn,
        tiles_per_core=tiles_per_core,
        n_splits=n_splits,
        needs_tail_mask=needs_tail_mask,
    )

    def tile_map(c, i):
        return (0, c * tiles_per_core + i)

    in_specs = [pl.BlockSpec((d, tn), tile_map) for _ in range(p + 1)]
    # TODO(synk): if xprof shows exposed DMA at moderate tn, switch the input
    # specs to pipeline_mode=pl.Buffered(3) (VMEM headroom is ample).

    out = pl.pallas_call(
        kernel,
        out_shape=jax.ShapeDtypeStruct((n_splits, 8, 128), jnp.float32),
        grid=(n_splits, tiles_per_core),
        in_specs=in_specs,
        out_specs=pl.BlockSpec((1, 8, 128), lambda c, i: (c, 0, 0)),
        scratch_shapes=[pltpu.SMEM((1,), jnp.float32)],
        compiler_params=pltpu.CompilerParams(
            dimension_semantics=("parallel", "arbitrary"),
            vmem_limit_bytes=32 * 1024 * 1024,
        ),
        cost_estimate=pl.CostEstimate(
            flops=int(4 * (p + 1) * d * n),
            transcendentals=int((2 * p + 2) * n),
            bytes_accessed=int((p + 1) * n * d * itemsize + n_splits * 4096),
        ),
    )(zc_t, *others_t)

    per_core = out[:, 0, 0]                  # (n_splits,)
    return jnp.sum(per_core) / jnp.float32(n)   # mean over the TRUE N


def _prepare_step(z, t, n_negatives, key):
    """Host glue: current/future views + permuted negatives for step t.

    Returns (D, N)-transposed arrays so the kernel sees N on lanes; no padding
    and no (P, N, D) stack is ever materialized.
    """
    _, _, d = z.shape
    z_current = z[:, :-t, :].reshape(-1, d)            # (N, D)
    z_future = z[:, t:, :].reshape(-1, d)              # (N, D)
    n = z_current.shape[0]
    zc_t = z_current.T                                  # (D, N)
    others_t = [z_future.T]                             # entry 0 = positives
    # TODO(synk): gather negatives inside the kernel from scalar-prefetched
    # permutation indices (manual DMA from a single z_future HBM buffer)
    # instead of materializing P permuted copies here.
    for _ in range(n_negatives):
        key, sub = jax.random.split(key)
        perm = jax.random.permutation(sub, n)
        others_t.append(jnp.take(z_future, perm, axis=0).T)
    return zc_t, others_t, key


def infonce_loss(z, key, *, pred_steps=1, pred_offset=0, n_negatives=1,
                 temperature=0.07):
    """JAX/Pallas equivalent of InfoNCELoss.forward (cosine similarity)."""
    steps = list(range(1 + pred_offset, 1 + pred_offset + pred_steps))
    total = jnp.float32(0.0)
    # TODO(synk): fold the pred-step loop into a single pallas_call (extra grid
    # axis expressing the time shift via index_map) when pred_steps > 1.
    for t in steps:
        zc_t, others_t, key = _prepare_step(z, t, n_negatives, key)
        total = total + _infonce_step(zc_t, others_t, temperature)
    return total / len(steps)


infonce_loss_jit = jax.jit(
    infonce_loss,
    static_argnames=("pred_steps", "pred_offset", "n_negatives", "temperature"),
)


def _infonce_reference(z, key, *, pred_steps, pred_offset, n_negatives,
                       temperature):
    """Pure-jnp reference mirroring the torch module (same permutations)."""
    steps = list(range(1 + pred_offset, 1 + pred_offset + pred_steps))
    total = jnp.float32(0.0)
    for t in steps:
        zc_t, others_t, key = _prepare_step(z, t, n_negatives, key)
        zc = zc_t.T                                               # (N, D)
        zo = jnp.stack([o.T for o in others_t], axis=0)           # (P, N, D)
        dot = jnp.sum(zc[None, :, :] * zo, axis=-1)               # (P, N)
        nc = jnp.maximum(jnp.sqrt(jnp.sum(zc * zc, axis=-1)), _EPS)
        no = jnp.maximum(jnp.sqrt(jnp.sum(zo * zo, axis=-1)), _EPS)
        sims = dot / (nc[None, :] * no)
        logits = (sims / temperature).T                           # (N, P)
        lse = jax.nn.logsumexp(logits, axis=-1)
        total = total + jnp.mean(lse - logits[:, 0])
    return total / len(steps)


if __name__ == "__main__":
    key = jax.random.PRNGKey(0)
    k_small, k_neg1, k_big, k_neg2 = jax.random.split(key, 4)

    # Case 1: module-default small shape (batch=2, seq=8, embedding=32).
    # Exercises the single-tile path with a masked partial block (N = 14).
    z_small = jax.random.normal(k_small, (2, 8, 32), dtype=jnp.float32)
    loss_small = jax.block_until_ready(
        infonce_loss_jit(z_small, k_neg1, pred_steps=1, pred_offset=0,
                         n_negatives=1, temperature=0.07))
    ref_small = _infonce_reference(z_small, k_neg1, pred_steps=1,
                                   pred_offset=0, n_negatives=1,
                                   temperature=0.07)
    assert loss_small.shape == () and bool(jnp.isfinite(loss_small))
    assert bool(jnp.allclose(loss_small, ref_small, rtol=5e-3, atol=1e-3)), (
        loss_small, ref_small)

    # Case 2: longer sequence -> 4 lane-tiles (N = 24578, tn = 8192).
    # Exercises the 2-way core split, multi-tile accumulation per core and
    # the gated tail mask.
    z_big = jax.random.normal(k_big, (2, 12290, 32), dtype=jnp.float32)
    loss_big = jax.block_until_ready(
        infonce_loss_jit(z_big, k_neg2, pred_steps=1, pred_offset=0,
                         n_negatives=1, temperature=0.07))
    ref_big = _infonce_reference(z_big, k_neg2, pred_steps=1, pred_offset=0,
                                 n_negatives=1, temperature=0.07)
    assert loss_big.shape == () and bool(jnp.isfinite(loss_big))
    assert bool(jnp.allclose(loss_big, ref_big, rtol=5e-3, atol=1e-3)), (
        loss_big, ref_big)

    print("KERNEL_OK")
</pallas_src>

<mosaic_0001>
module attributes {stable_mosaic.version = 11 : i64} {
  func.func @_infonce_step_kernel(%arg0: i32, %arg1: i32, %arg2: memref<32x128xf32, #tpu.memory_space<vmem>>, %arg3: memref<32x128xf32, #tpu.memory_space<vmem>>, %arg4: memref<32x128xf32, #tpu.memory_space<vmem>>, %arg5: memref<1x8x128xf32, #tpu.memory_space<vmem>>, %arg6: memref<1xf32, #tpu.memory_space<smem>>) attributes {dimension_semantics = [#tpu.dimension_semantics<parallel>, #tpu.dimension_semantics<arbitrary>], iteration_bounds = array<i64: 1, 1>, scalar_prefetch = 0 : i64, scratch_operands = 1 : i64, tpu.core_type = #tpu.core_type<tc>, window_params = [{transform_indices = @transform_0, window_bounds = array<i64: 32, 128>}, {transform_indices = @transform_1, window_bounds = array<i64: 32, 128>}, {transform_indices = @transform_2, window_bounds = array<i64: 32, 128>}, {transform_indices = @transform_3, window_bounds = array<i64: 1, 8, 128>}]} {
    %c0_i32 = arith.constant 0 : i32
    %0 = arith.cmpi eq, %arg1, %c0_i32 : i32
    %1 = arith.extui %0 : i1 to i32
    %c0_i32_0 = arith.constant 0 : i32
    %2 = arith.cmpi ne, %1, %c0_i32_0 : i32
    scf.if %2 {
      %cst_21 = arith.constant 0.000000e+00 : f32
      %c0_22 = arith.constant 0 : index
      %58 = memref.load %arg6[%c0_22] : memref<1xf32, #tpu.memory_space<smem>>
      memref.store %cst_21, %arg6[%c0_22] : memref<1xf32, #tpu.memory_space<smem>>
      %cst_23 = arith.constant 0.000000e+00 : f32
      %59 = vector.broadcast %cst_23 : f32 to vector<1x8x128xf32>
      %c0_24 = arith.constant 0 : index
      %c0_25 = arith.constant 0 : index
      %c0_26 = arith.constant 0 : index
      %60 = vector.load %arg5[%c0_24, %c0_25, %c0_26] : memref<1x8x128xf32, #tpu.memory_space<vmem>>, vector<1x8x128xf32>
      tpu.vector_store %arg5[%c0_24, %c0_25, %c0_26], %59 {strides = array<i32>} : memref<1x8x128xf32, #tpu.memory_space<vmem>>, vector<1x8x128xf32>,
    } else {
    }
    %c0 = arith.constant 0 : index
    %c0_1 = arith.constant 0 : index
    %3 = vector.load %arg2[%c0, %c0_1] : memref<32x128xf32, #tpu.memory_space<vmem>>, vector<32x128xf32>
    %4 = arith.mulf %3, %3 : vector<32x128xf32>
    %cst = arith.constant dense<0.000000e+00> : vector<128xf32>
    %5 = vector.multi_reduction <add>, %4, %cst [0] : vector<32x128xf32> to vector<128xf32>
    %6 = vector.shape_cast %5 : vector<128xf32> to vector<1x128xf32>
    %7 = math.sqrt %6 : vector<1x128xf32>
    %cst_2 = arith.constant 9.99999993E-9 : f32
    %8 = vector.broadcast %cst_2 : f32 to vector<1x128xf32>
    %9 = arith.maximumf %7, %8 : vector<1x128xf32>
    %c0_3 = arith.constant 0 : index
    %c0_4 = arith.constant 0 : index
    %10 = vector.load %arg3[%c0_3, %c0_4] : memref<32x128xf32, #tpu.memory_space<vmem>>, vector<32x128xf32>
    %11 = arith.mulf %3, %10 : vector<32x128xf32>
    %cst_5 = arith.constant dense<0.000000e+00> : vector<128xf32>
    %12 = vector.multi_reduction <add>, %11, %cst_5 [0] : vector<32x128xf32> to vector<128xf32>
    %13 = vector.shape_cast %12 : vector<128xf32> to vector<1x128xf32>
    %14 = arith.mulf %10, %10 : vector<32x128xf32>
    %cst_6 = arith.constant dense<0.000000e+00> : vector<128xf32>
    %15 = vector.multi_reduction <add>, %14, %cst_6 [0] : vector<32x128xf32> to vector<128xf32>
    %16 = vector.shape_cast %15 : vector<128xf32> to vector<1x128xf32>
    %17 = math.sqrt %16 : vector<1x128xf32>
    %cst_7 = arith.constant 9.99999993E-9 : f32
    %18 = vector.broadcast %cst_7 : f32 to vector<1x128xf32>
    %19 = arith.maximumf %17, %18 : vector<1x128xf32>
    %20 = arith.mulf %9, %19 : vector<1x128xf32>
    %21 = arith.divf %13, %20 : vector<1x128xf32>
    %cst_8 = arith.constant 14.2857141 : f32
    %22 = vector.broadcast %cst_8 : f32 to vector<1x128xf32>
    %23 = arith.mulf %21, %22 : vector<1x128xf32>
    %c0_9 = arith.constant 0 : index
    %c0_10 = arith.constant 0 : index
    %24 = vector.load %arg4[%c0_9, %c0_10] : memref<32x128xf32, #tpu.memory_space<vmem>>, vector<32x128xf32>
    %25 = arith.mulf %3, %24 : vector<32x128xf32>
    %cst_11 = arith.constant dense<0.000000e+00> : vector<128xf32>
    %26 = vector.multi_reduction <add>, %25, %cst_11 [0] : vector<32x128xf32> to vector<128xf32>
    %27 = vector.shape_cast %26 : vector<128xf32> to vector<1x128xf32>
    %28 = arith.mulf %24, %24 : vector<32x128xf32>
    %cst_12 = arith.constant dense<0.000000e+00> : vector<128xf32>
    %29 = vector.multi_reduction <add>, %28, %cst_12 [0] : vector<32x128xf32> to vector<128xf32>
    %30 = vector.shape_cast %29 : vector<128xf32> to vector<1x128xf32>
    %31 = math.sqrt %30 : vector<1x128xf32>
    %cst_13 = arith.constant 9.99999993E-9 : f32
    %32 = vector.broadcast %cst_13 : f32 to vector<1x128xf32>
    %33 = arith.maximumf %31, %32 : vector<1x128xf32>
    %34 = arith.mulf %9, %33 : vector<1x128xf32>
    %35 = arith.divf %27, %34 : vector<1x128xf32>
    %cst_14 = arith.constant 14.2857141 : f32
    %36 = vector.broadcast %cst_14 : f32 to vector<1x128xf32>
    %37 = arith.mulf %35, %36 : vector<1x128xf32>
    %38 = arith.maximumf %23, %37 : vector<1x128xf32>
    %39 = arith.subf %23, %38 : vector<1x128xf32>
    %40 = math.exp %39 : vector<1x128xf32>
    %41 = arith.subf %37, %38 : vector<1x128xf32>
    %42 = math.exp %41 : vector<1x128xf32>
    %43 = arith.addf %40, %42 : vector<1x128xf32>
    %44 = math.log %43 : vector<1x128xf32>
    %45 = arith.addf %38, %44 : vector<1x128xf32>
    %46 = arith.subf %45, %23 : vector<1x128xf32>
    %c0_i32_15 = arith.constant 0 : i32
    %47 = arith.cmpi eq, %arg0, %c0_i32_15 : i32
    %c0_i32_16 = arith.constant 0 : i32
    %48 = arith.cmpi eq, %arg1, %c0_i32_16 : i32
    %49 = arith.andi %47, %48 : i1
    %true = arith.constant true
    %50 = arith.xori %49, %true : i1
    %51 = arith.extui %50 : i1 to i32
    %c0_i32_17 = arith.constant 0 : i32
    %52 = arith.cmpi ne, %51, %c0_i32_17 : i32
    scf.if %52 {
      %c0_21 = arith.constant 0 : index
      %58 = memref.load %arg6[%c0_21] : memref<1xf32, #tpu.memory_space<smem>>
      %59 = vector.shape_cast %46 : vector<1x128xf32> to vector<1x1x128xf32>
      %cst_22 = arith.constant dense<0.000000e+00> : vector<1xf32>
      %60 = vector.multi_reduction <add>, %59, %cst_22 [1, 2] : vector<1x1x128xf32> to vector<1xf32>
      %61 = vector.shape_cast %60 : vector<1xf32> to vector<1x1x1xf32>
      %62 = vector.extract %61[0, 0, 0] : f32 from vector<1x1x1xf32>
      %63 = arith.addf %58, %62 : f32
      %c0_23 = arith.constant 0 : index
      %64 = memref.load %arg6[%c0_23] : memref<1xf32, #tpu.memory_space<smem>>
      memref.store %63, %arg6[%c0_23] : memref<1xf32, #tpu.memory_space<smem>>
    } else {
    }
    %53 = arith.extui %49 : i1 to i32
    %c0_i32_18 = arith.constant 0 : i32
    %54 = arith.cmpi ne, %53, %c0_i32_18 : i32
    scf.if %54 {
      %c1_i32 = arith.constant 1 : i32
      %58 = arith.muli %arg0, %c1_i32 : i32
      %59 = arith.addi %58, %arg1 : i32
      %c128_i32 = arith.constant 128 : i32
      %60 = arith.muli %59, %c128_i32 : i32
      %61 = tpu.iota {dimensions = array<i32: 1>} : vector<1x128xi32>
      %62 = vector.broadcast %60 : i32 to vector<1x128xi32>
      %63 = arith.addi %62, %61 : vector<1x128xi32>
      %c0_21 = arith.constant 0 : index
      %64 = memref.load %arg6[%c0_21] : memref<1xf32, #tpu.memory_space<smem>>
      %c14_i32 = arith.constant 14 : i32
      %65 = vector.broadcast %c14_i32 : i32 to vector<1x128xi32>
      %66 = arith.cmpi slt, %63, %65 : vector<1x128xi32>
      %cst_22 = arith.constant 0.000000e+00 : f32
      %67 = vector.broadcast %cst_22 : f32 to vector<1x128xf32>
      %68 = arith.select %66, %46, %67 : vector<1x128xi1>, vector<1x128xf32>
      %69 = vector.shape_cast %68 : vector<1x128xf32> to vector<1x1x128xf32>
      %cst_23 = arith.constant dense<0.000000e+00> : vector<1xf32>
      %70 = vector.multi_reduction <add>, %69, %cst_23 [1, 2] : vector<1x1x128xf32> to vector<1xf32>
      %71 = vector.shape_cast %70 : vector<1xf32> to vector<1x1x1xf32>
      %72 = vector.extract %71[0, 0, 0] : f32 from vector<1x1x1xf32>
      %73 = arith.addf %64, %72 : f32
      %c0_24 = arith.constant 0 : index
      %74 = memref.load %arg6[%c0_24] : memref<1xf32, #tpu.memory_space<smem>>
      memref.store %73, %arg6[%c0_24] : memref<1xf32, #tpu.memory_space<smem>>
    } else {
    }
    %c0_i32_19 = arith.constant 0 : i32
    %55 = arith.cmpi eq, %arg1, %c0_i32_19 : i32
    %56 = arith.extui %55 : i1 to i32
    %c0_i32_20 = arith.constant 0 : i32
    %57 = arith.cmpi ne, %56, %c0_i32_20 : i32
    scf.if %57 {
      %c0_21 = arith.constant 0 : index
      %58 = memref.load %arg6[%c0_21] : memref<1xf32, #tpu.memory_space<smem>>
      %59 = vector.broadcast %58 : f32 to vector<1x8x128xf32>
      %c0_22 = arith.constant 0 : index
      %c0_23 = arith.constant 0 : index
      %c0_24 = arith.constant 0 : index
      %60 = vector.load %arg5[%c0_22, %c0_23, %c0_24] : memref<1x8x128xf32, #tpu.memory_space<vmem>>, vector<1x8x128xf32>
      tpu.vector_store %arg5[%c0_22, %c0_23, %c0_24], %59 {strides = array<i32>} : memref<1x8x128xf32, #tpu.memory_space<vmem>>, vector<1x8x128xf32>,
    } else {
    }
    return
  }
  func.func @transform_0(%arg0: i32, %arg1: i32) -> (i32, i32) {
    %c1_i32 = arith.constant 1 : i32
    %0 = arith.muli %arg0, %c1_i32 : i32
    %1 = arith.addi %0, %arg1 : i32
    %c0_i32 = arith.constant 0 : i32
    %c0_i32_0 = arith.constant 0 : i32
    return %c0_i32, %1 : i32, i32
  }
  func.func @transform_1(%arg0: i32, %arg1: i32) -> (i32, i32) {
    %c1_i32 = arith.constant 1 : i32
    %0 = arith.muli %arg0, %c1_i32 : i32
    %1 = arith.addi %0, %arg1 : i32
    %c0_i32 = arith.constant 0 : i32
    %c0_i32_0 = arith.constant 0 : i32
    return %c0_i32, %1 : i32, i32
  }
  func.func @transform_2(%arg0: i32, %arg1: i32) -> (i32, i32) {
    %c1_i32 = arith.constant 1 : i32
    %0 = arith.muli %arg0, %c1_i32 : i32
    %1 = arith.addi %0, %arg1 : i32
    %c0_i32 = arith.constant 0 : i32
    %c0_i32_0 = arith.constant 0 : i32
    return %c0_i32, %1 : i32, i32
  }
  func.func @transform_3(%arg0: i32, %arg1: i32) -> (i32, i32, i32) {
    %c0_i32 = arith.constant 0 : i32
    %c0_i32_0 = arith.constant 0 : i32
    %c0_i32_1 = arith.constant 0 : i32
    return %arg0, %c0_i32, %c0_i32_0 : i32, i32, i32
  }
}

</mosaic_0001>

<bundles_post_ra>
// kernel: infonce_loss.1
= control target key start
LH: loop header
LB: loop body
LE: loop exit
PB: predicated region body
PF: predicated region fallthrough
CT: control target
= control target key end

     0   :  { %vm207_vm7 = vcmask 1040384   ;;  %s345_s0 = inlined_call_operand.vmem [shape: f32[32,14], index: 0, kind: input, shape index: {}]   ;;  %s346_s1 = inlined_call_operand.vmem [shape: f32[32,14], index: 1, kind: input, shape index: {}]   ;;  %s347_s2 = inlined_call_operand.vmem [shape: f32[32,14], index: 2, kind: input, shape index: {}]   ;;  %s348_s3 = inlined_call_operand.vmem [shape: f32[1,8,128], index: 3, kind: output, shape index: {}]  }
   0x1   :  { %v72_v0 = vld [vmem:[%s345_s0] sm:$0xff]  ;;  %v73_v1 = vld [vmem:[%s345_s0 + $0x8] sm:$0xff]  ;;  %v74_v2 = vld [vmem:[%s345_s0 + $0x10] sm:$0xff] }
   0x2   :  { %v75_v3 = vld [vmem:[%s345_s0 + $0x18] sm:$0xff]  ;;  %v76_v4 = vmul.f32 %v72_v0, %v72_v0  ;;  %v77_v5 = vmul.f32 %v73_v1, %v73_v1  ;;  %v78_v6 = vmul.f32 %v74_v2, %v74_v2  ;;  %v97_v7 = vld [vmem:[%s346_s1] sm:$0xff]  ;;  %v98_v8 = vld [vmem:[%s346_s1 + $0x8] sm:$0xff] }
   0x3   :  { %v99_v9 = vld [vmem:[%s346_s1 + $0x10] sm:$0xff]  ;;  %v100_v10 = vld [vmem:[%s346_s1 + $0x18] sm:$0xff]  ;;  %v114_v11 = vmul.f32 %v97_v7, %v97_v7  ;;  %v79_v12 = vmul.f32 %v75_v3, %v75_v3  ;;  %v115_v14 = vmul.f32 %v98_v8, %v98_v8  ;;  %v139_v15 = vld [vmem:[%s347_s2] sm:$0xff]  ;;  %v101_v46 = vmul.f32 %v97_v7, %v72_v0 }
   0x4   :  { %v80_v13 = vadd.f32 %v77_v5, %v76_v4  ;;  %v140_v16 = vld [vmem:[%s347_s2 + $0x8] sm:$0xff]  ;;  %v116_v17 = vmul.f32 %v99_v9, %v99_v9  ;;  %v141_v18 = vld [vmem:[%s347_s2 + $0x10] sm:$0xff]  ;;  %v117_v20 = vmul.f32 %v100_v10, %v100_v10  ;;  %v142_v22 = vld [vmem:[%s347_s2 + $0x18] sm:$0xff]  ;;  %v156_v23 = vmul.f32 %v139_v15, %v139_v15 }
   0x5   :  { %v118_v21 = vadd.f32 %v115_v14, %v114_v11  ;;  %v157_v24 = vmul.f32 %v140_v16, %v140_v16  ;;  %v158_v27 = vmul.f32 %v141_v18, %v141_v18  ;;  %v159_v28 = vmul.f32 %v142_v22, %v142_v22 }
   0x6   :  { %v81_v19 = vadd.f32 %v80_v13, %v78_v6  ;;  %v102_v47 = vmul.f32 %v98_v8, %v73_v1  ;;  %v103_v52 = vmul.f32 %v99_v9, %v74_v2  ;;  %v143_v54 = vmul.f32 %v139_v15, %v72_v0 }
   0x7   :  { %v119_v26 = vadd.f32 %v118_v21, %v116_v17  ;;  %v160_v29 = vadd.f32 %v157_v24, %v156_v23  ;;  %v144_v55 = vmul.f32 %v140_v16, %v73_v1  ;;  %v104_v57 = vmul.f32 %v100_v10, %v75_v3 }
   0x8   :  { %v82_v25 = vadd.f32 %v81_v19, %v79_v12  ;;  %v105_v53 = vadd.f32 %v102_v47, %v101_v46  ;;  %v145_v59 = vmul.f32 %v141_v18, %v74_v2  ;;  %v146_v62 = vmul.f32 %v142_v22, %v75_v3 }
   0x9   :  { %v120_v31 = vadd.f32 %v119_v26, %v117_v20  ;;  %v161_v32 = vadd.f32 %v160_v29, %v158_v27  ;;  %v147_v60 = vadd.f32 %v144_v55, %v143_v54  ;;  %v200_v47 = vlaneseq }
   0xa   :  { %v83_v30 = vrot.slane %v82_v25, 4  ;;  %v106_v58 = vadd.f32 %v105_v53, %v103_v52 }
   0xb   :  { %v121_v34 = vrot.slane %v120_v31, 4  ;;  %v162_v35 = vadd.f32 %v161_v32, %v159_v28  ;;  %v148_v63 = vadd.f32 %v147_v60, %v145_v59 }
   0xc   :  { %v84_v33 = vadd.f32 %v83_v30, %v82_v25  ;;  %v107_v61 = vadd.f32 %v106_v58, %v104_v57 }
   0xd   :  { %v122_v37 = vadd.f32 %v121_v34, %v120_v31  ;;  %v163_v38 = vrot.slane %v162_v35, 4  ;;  %v149_v8 = vadd.f32 %v148_v63, %v146_v62 }
   0xe   :  { %v85_v36 = vrot.slane %v84_v33, 2  ;;  %v108_v7 = vrot.slane %v107_v61, 4 }
   0xf   :  { %v123_v40 = vrot.slane %v122_v37, 2  ;;  %v164_v41 = vadd.f32 %v163_v38, %v162_v35  ;;  %v150_v12 = vrot.slane %v149_v8, 4 }
  0x10   :  { %v86_v39 = vadd.f32 %v85_v36, %v84_v33  ;;  %v109_v2 = vadd.f32 %v108_v7, %v107_v61 }
  0x11   :  { %v124_v43 = vadd.f32 %v123_v40, %v122_v37  ;;  %v165_v44 = vrot.slane %v164_v41, 2  ;;  %v151_v19 = vadd.f32 %v150_v12, %v149_v8 }
  0x12   :  { %v87_v42 = vrot.slane %v86_v39, 1  ;;  %v110_v21 = vrot.slane %v109_v2, 2 }
  0x13   :  { %v125_v48 = vrot.slane %v124_v43, 1  ;;  %v166_v49 = vadd.f32 %v165_v44, %v164_v41  ;;  %v152_v25 = vrot.slane %v151_v19, 2 }
  0x14   :  { %v88_v45 = vadd.f32 %v87_v42, %v86_v39  ;;  %v111_v27 = vadd.f32 %v110_v21, %v109_v2 }
  0x15   :  { %v126_v50 = vadd.f32 %v125_v48, %v124_v43  ;;  %v167_v51 = vrot.slane %v166_v49, 1  ;;  %v153_v28 = vadd.f32 %v152_v25, %v151_v19 }
  0x16   :  { %270 = vrsqrt.f32 %v88_v45  ;;  %vm91_vm0 = vcmp.eq.f32.partialorder %v88_v45, inf  ;;  %v94_v5 = vand.u32 2147483648, %v88_v45  ;;  %vm93_vm1 = vcmp.eq.f32.partialorder %v88_v45, 0.0 }
  0x17   :  { %272 = vrsqrt.f32 %v126_v50  ;;  %v168_v56 = vadd.f32 %v167_v51, %v166_v49  ;;  %vm129_vm2 = vcmp.eq.f32.partialorder %v126_v50, inf  ;;  %v132_v1 = vand.u32 2147483648, %v126_v50 }
  0x18   :  { %vm131_vm3 = vcmp.eq.f32.partialorder %v126_v50, 0.0  ;;  %v112_v29 = vrot.slane %v111_v27, 1  ;;  %v154_v30 = vrot.slane %v153_v28, 1  ;;  %v201_v49 = vand.u32 127, %v200_v47 }
  0x19   :  { %274 = vrsqrt.f32 %v168_v56  ;;  %vm171_vm4 = vcmp.eq.f32.partialorder %v168_v56, inf  ;;  %v174_v15 = vand.u32 2147483648, %v168_v56  ;;  %vm173_vm5 = vcmp.eq.f32.partialorder %v168_v56, 0.0 }
  0x1a   :  { %v113_v31 = vadd.f32 %v112_v29, %v111_v27  ;;  %v155_v33 = vadd.f32 %v154_v30, %v153_v28  ;;  %vm205_vm6 = vcmp.lt.s32.totalorder %v201_v49, 14 }
  0x23   :  { %v271_v4 = vpop.eup %270 }
  0x24   :  { %v90_v6 = vmul.f32 %v271_v4, %v88_v45  ;;  %v273_v9 = vpop.eup %272 }
  0x25   :  { %v128_v10 = vmul.f32 %v273_v9, %v126_v50 }
  0x26   :  { %v92_v0 = vsel %vm91_vm0, %v88_v45, %v90_v6  ;;  %v275_v13 = vpop.eup %274 }
  0x27   :  { %v95_v11 = vsel %vm93_vm1, %v94_v5, %v92_v0  ;;  %v130_v3 = vsel %vm129_vm2, %v126_v50, %v128_v10  ;;  %v170_v17 = vmul.f32 %v275_v13, %v168_v56 }
  0x28   :  { %v96_v14 = vmax.f32 %v95_v11, 1e-08  ;;  %v133_v16 = vsel %vm131_vm3, %v132_v1, %v130_v3 }
  0x29   :  { %v134_v18 = vmax.f32 %v133_v16, 1e-08  ;;  %v172_v20 = vsel %vm171_vm4, %v168_v56, %v170_v17 }
  0x2a   :  { %v175_v23 = vsel %vm173_vm5, %v174_v15, %v172_v20 }
  0x2b   :  { %v135_v22 = vmul.f32 %v134_v18, %v96_v14  ;;  %v176_v24 = vmax.f32 %v175_v23, 1e-08 }
  0x2d   :  { %276 = vrcp.f32 %v135_v22  ;;  %v177_v26 = vmul.f32 %v176_v24, %v96_v14 }
  0x2f   :  { %278 = vrcp.f32 %v177_v26 }
  0x3a   :  { %v277_v32 = vpop.eup %276 }
  0x3b   :  { %v137_v34 = vmul.f32 %v277_v32, %v113_v31 }
  0x3c   :  { %v279_v35 = vpop.eup %278 }
  0x3d   :  { %v138_v36 = vmul.f32 14.285714, %v137_v34  ;;  %v179_v37 = vmul.f32 %v279_v35, %v155_v33 }
  0x3f   :  { %v180_v38 = vmul.f32 14.285714, %v179_v37 }
  0x41   :  { %v181_v39 = vmax.f32 %v138_v36, %v180_v38 }
  0x43   :  { %v182_v40 = vsub.f32 %v138_v36, %v181_v39  ;;  %v185_v41 = vsub.f32 %v180_v38, %v181_v39 }
  0x45   :  { %v183_v42 = vmul.f32 1.442695, %v182_v40  ;;  %v186_v43 = vmul.f32 1.442695, %v185_v41 }
  0x47   :  { %280 = vpow2.f32 %v183_v42 }
  0x48   :  { %282 = vpow2.f32 %v186_v43 }
  0x54   :  { %v281_v44 = vpop.eup %280 }
  0x55   :  { %v283_v45 = vpop.eup %282 }
  0x56   :  { %v188_v46 = vadd.f32 %v283_v45, %v281_v44 }
  0x58   :  { %284 = vlog2.f32 %v188_v46 }
  0x65   :  { %v285_v48 = vpop.eup %284 }
  0x66   :  { %v190_v50 = vmul.f32 0.6931472, %v285_v48 }
  0x68   :  { %v191_v51 = vadd.f32 %v190_v50, %v181_v39 }
  0x6a   :  { %v192_v52 = vsub.f32 %v191_v51, %v138_v36 }
  0x6c   :  { %v206_v53 = vsel %vm205_vm6, %v192_v52, 0.0 }
  0x6d   :  { %v208_v54 = vsel %vm207_vm7, %v206_v53, 0.0 }
  0x6e   :  { %209 = vadd.xlane.f32.xlu0 %v208_v54 }
  0xf7   :  { %v210_v55 = vpop.xlane.xlu0 %209 }
  0xf8   :  { %v211_v56 = vrot.slane %v210_v55, 4 }
  0xfa   :  { %v212_v57 = vadd.f32 %v211_v56, %v210_v55 }
  0xfc   :  { %v213_v58 = vrot.slane %v212_v57, 2 }
  0xfe   :  { %v214_v59 = vadd.f32 %v213_v58, %v212_v57 }
 0x100   :  { %v215_v60 = vrot.slane %v214_v59, 1 }
 0x102   :  { %v216_v61 = vadd.f32 %v215_v60, %v214_v59 }
 0x104   :  { %267 = vpush %v216_v61 }
 0x135   :  { %s268_s2 = spop %267 }
 0x136   :  { %v243_v62 = vstv %s268_s2 }
 0x137   :  { %244 = vst [vmem:[%s348_s3] sm:$0xff] %v243_v62 }

</bundles_post_ra>
